<compile_context>
chip_gen: v7x
topology: tpu7x:2x2x1
jax: 0.10.0
libtpu: 0.0.40
codegen_flags: <defaults>
</compile_context>

<pallas_src>
import math
import functools

import jax
import jax.numpy as jnp
from jax.experimental import pallas as pl
from jax.experimental.pallas import tpu as pltpu


_LN_EPS = 1e-5
_NEG_BIG = -1e30  # finite "minus infinity" for masked key columns


def _vmem_limit_bytes():
    # ~3/4 of physical VMEM per generation (96 MiB on v5e/v6e, 48 MiB on v7x),
    # capped; fall back to a conservative 64 MiB if the query fails.
    try:
        cap = pltpu.get_tpu_info().vmem_capacity_bytes
        return min(int(cap) * 3 // 4, 100 * 1024 * 1024)
    except Exception:
        return 64 * 1024 * 1024


# --------------------------------------------------------------------------------------
# Kernel 1: fused LayerNorm (affine folded into W/b at trace time) + linear projection.
# --------------------------------------------------------------------------------------

def _ln_project_kernel(x_ref, w_ref, b_ref, o_ref):
    x = x_ref[0].astype(jnp.float32)                           # (ts, D)
    mu = jnp.mean(x, axis=-1, keepdims=True)
    var = jnp.mean(jnp.square(x - mu), axis=-1, keepdims=True)
    xhat = (x - mu) * jax.lax.rsqrt(var + _LN_EPS)             # f32 VPU math (v5e-safe)
    y = jnp.dot(xhat.astype(w_ref.dtype), w_ref[...],          # bf16 MXU, f32 accumulate
                preferred_element_type=jnp.float32) + b_ref[...]
    o_ref[0] = y.astype(o_ref.dtype)


def _ln_project(x, w, b, *, tile, out_dtype):
    B, S, D = x.shape
    ts = S if S <= tile else tile                               # ts multiple of 8 or full
    grid = (B, pl.cdiv(S, ts))
    return pl.pallas_call(
        _ln_project_kernel,
        out_shape=jax.ShapeDtypeStruct((B, S, D), out_dtype),
        grid=grid,
        in_specs=[
            pl.BlockSpec((1, ts, D), lambda bi, si: (bi, si, 0)),
            pl.BlockSpec((D, D), lambda bi, si: (0, 0)),        # folded weight (bf16)
            pl.BlockSpec((1, D), lambda bi, si: (0, 0)),        # folded bias   (f32)
        ],
        out_specs=pl.BlockSpec((1, ts, D), lambda bi, si: (bi, si, 0)),
        compiler_params=pltpu.CompilerParams(
            dimension_semantics=("parallel", "parallel"),
            vmem_limit_bytes=_vmem_limit_bytes(),
        ),
    )(x, w, b)


# --------------------------------------------------------------------------------------
# Kernel 2: flash-style multi-head attention + fused output projection.
#   grid = (B, Sq tiles, Sk tiles); Sk axis is an online-softmax reduction.
#   Q/K/V arrive pre-projected, head-major (B, H, S, dh), bf16; scale folded into Q.
# --------------------------------------------------------------------------------------

def _flash_attn_kernel(q_ref, k_ref, v_ref, wo_ref, bo_ref, o_ref,
                       m_sc, l_sc, acc_sc, *, sk_total, blk_k):
    ki = pl.program_id(2)
    nk = pl.num_programs(2)

    @pl.when(ki == 0)
    def _init():
        m_sc[...] = jnp.full(m_sc.shape, -jnp.inf, jnp.float32)
        l_sc[...] = jnp.zeros(l_sc.shape, jnp.float32)
        acc_sc[...] = jnp.zeros(acc_sc.shape, jnp.float32)

    q = q_ref[0]                                    # (H, tq, dh) bf16, pre-scaled
    k = k_ref[0]                                    # (H, tk, dh) bf16
    v = v_ref[0]                                    # (H, tk, dh) bf16

    # Head-batched QK^T on the MXU (bf16 in, f32 out).
    s = jnp.einsum("hqd,hkd->hqk", q, k,
                   preferred_element_type=jnp.float32)          # (H, tq, tk)

    if sk_total % blk_k != 0:                       # mask padded key columns (edge tile)
        col = ki * blk_k + jax.lax.broadcasted_iota(jnp.int32, (1, 1, blk_k), 2)
        s = jnp.where(col < sk_total, s, _NEG_BIG)

    # Online softmax update (f32 on VPU/EUP).
    m_prev = m_sc[...]
    m_new = jnp.maximum(m_prev, jnp.max(s, axis=-1, keepdims=True))
    alpha = jnp.exp(m_prev - m_new)
    p = jnp.exp(s - m_new)
    l_sc[...] = alpha * l_sc[...] + jnp.sum(p, axis=-1, keepdims=True)
    acc_sc[...] = alpha * acc_sc[...] + jnp.einsum(
        "hqk,hkd->hqd", p.astype(v.dtype), v, preferred_element_type=jnp.float32)
    m_sc[...] = m_new

    @pl.when(ki == nk - 1)
    def _finalize():
        attn = acc_sc[...] / l_sc[...]                           # (H, tq, dh) f32
        # Head-merged output projection as a head-batched matmul + sum over heads
        # (wo is pre-reshaped to (H, dh, D) at trace time -> no in-kernel transpose).
        out_h = jnp.einsum("hqd,hdn->hqn", attn.astype(wo_ref.dtype), wo_ref[...],
                           preferred_element_type=jnp.float32)   # (H, tq, D)
        out = jnp.sum(out_h, axis=0) + bo_ref[...]
        o_ref[0] = out.astype(o_ref.dtype)


# ------------------------------------------ wrapper ------------------------------------

def cross_attention_layer(query, key, value, params, heads,
                          *, q_tile=256, k_tile=512, proj_tile=256):
    B, Sq, D = query.shape
    Sk = key.shape[1]
    assert D % heads == 0
    dh = D // heads
    scale = 1.0 / math.sqrt(dh)
    out_dtype = query.dtype
    wdt = jnp.bfloat16                               # MXU operand dtype (f32 accumulate)

    # ---- trace-time parameter prep: transpose, LN-affine fold, scale fold, bf16 cast.
    w_in = params["in_proj_w"].astype(jnp.float32)
    b_in = params["in_proj_b"].astype(jnp.float32)
    w_o = params["out_proj_w"].astype(jnp.float32)
    b_o = params["out_proj_b"].astype(jnp.float32)
    g_q, b_lnq = params["ln_q_g"].astype(jnp.float32), params["ln_q_b"].astype(jnp.float32)
    g_kv, b_lnkv = params["ln_kv_g"].astype(jnp.float32), params["ln_kv_b"].astype(jnp.float32)

    wq_t, wk_t, wv_t = w_in[:D].T, w_in[D:2 * D].T, w_in[2 * D:].T
    bq, bk, bv = b_in[:D], b_in[D:2 * D], b_in[2 * D:]

    # LN(x)@W^T + b  ==  x_hat @ (diag(g) W^T) + (b_ln @ W^T + b);  1/sqrt(dh) into Q.
    wq_f = ((g_q[:, None] * wq_t) * scale).astype(wdt)
    bq_f = ((b_lnq @ wq_t + bq) * scale).reshape(1, D)
    wk_f = (g_kv[:, None] * wk_t).astype(wdt)
    bk_f = (b_lnkv @ wk_t + bk).reshape(1, D)
    wv_f = (g_kv[:, None] * wv_t).astype(wdt)
    bv_f = (b_lnkv @ wv_t + bv).reshape(1, D)
    wo_h = w_o.T.reshape(heads, dh, D).astype(wdt)   # head-major output projection
    bo = b_o.reshape(1, D)

    # ---- normalize + project each tensor exactly once (bf16 outputs).
    q_p = _ln_project(query, wq_f, bq_f, tile=proj_tile, out_dtype=wdt)
    k_p = _ln_project(key, wk_f, bk_f, tile=proj_tile, out_dtype=wdt)
    v_p = _ln_project(value, wv_f, bv_f, tile=proj_tile, out_dtype=wdt)

    # One head-split transpose in HBM (XLA) so the attention kernel needs no
    # in-kernel transposes / per-head slicing.
    def split_heads(x, S):
        return x.reshape(B, S, heads, dh).transpose(0, 2, 1, 3)   # (B, H, S, dh)
    q_h = split_heads(q_p, Sq)
    k_h = split_heads(k_p, Sk)
    v_h = split_heads(v_p, Sk)

    tq = Sq if Sq <= q_tile else q_tile
    tk = Sk if Sk <= k_tile else k_tile
    grid = (B, pl.cdiv(Sq, tq), pl.cdiv(Sk, tk))

    kernel = functools.partial(_flash_attn_kernel, sk_total=Sk, blk_k=tk)
    return pl.pallas_call(
        kernel,
        out_shape=jax.ShapeDtypeStruct((B, Sq, D), out_dtype),
        grid=grid,
        in_specs=[
            pl.BlockSpec((1, heads, tq, dh), lambda b, qi, ki: (b, 0, qi, 0)),
            pl.BlockSpec((1, heads, tk, dh), lambda b, qi, ki: (b, 0, ki, 0)),
            pl.BlockSpec((1, heads, tk, dh), lambda b, qi, ki: (b, 0, ki, 0)),
            pl.BlockSpec((heads, dh, D), lambda b, qi, ki: (0, 0, 0)),   # Wo (bf16)
            pl.BlockSpec((1, D), lambda b, qi, ki: (0, 0)),              # bo (f32)
        ],
        out_specs=pl.BlockSpec((1, tq, D), lambda b, qi, ki: (b, qi, 0)),
        scratch_shapes=[
            pltpu.VMEM((heads, tq, 1), jnp.float32),    # running max
            pltpu.VMEM((heads, tq, 1), jnp.float32),    # running denom
            pltpu.VMEM((heads, tq, dh), jnp.float32),   # running output accumulator
        ],
        compiler_params=pltpu.CompilerParams(
            dimension_semantics=("parallel", "parallel", "arbitrary"),
            vmem_limit_bytes=_vmem_limit_bytes(),
        ),
    )(q_h, k_h, v_h, wo_h, bo)


# ------------------------------------ pure-JAX reference --------------------------------

def reference(query, key, value, params, heads):
    def ln(x, g, b):
        m = jnp.mean(x, axis=-1, keepdims=True)
        v = jnp.mean(jnp.square(x - m), axis=-1, keepdims=True)
        return (x - m) * jax.lax.rsqrt(v + _LN_EPS) * g + b

    B, Sq, D = query.shape
    Sk = key.shape[1]
    Dh = D // heads
    qn = ln(query, params["ln_q_g"], params["ln_q_b"])
    kn = ln(key, params["ln_kv_g"], params["ln_kv_b"])
    vn = ln(value, params["ln_kv_g"], params["ln_kv_b"])

    w_in, b_in = params["in_proj_w"], params["in_proj_b"]
    q = qn @ w_in[:D].T + b_in[:D]
    k = kn @ w_in[D:2 * D].T + b_in[D:2 * D]
    v = vn @ w_in[2 * D:].T + b_in[2 * D:]

    q = q.reshape(B, Sq, heads, Dh).transpose(0, 2, 1, 3)
    k = k.reshape(B, Sk, heads, Dh).transpose(0, 2, 1, 3)
    v = v.reshape(B, Sk, heads, Dh).transpose(0, 2, 1, 3)

    s = jnp.einsum("bhqd,bhkd->bhqk", q, k) / math.sqrt(Dh)
    p = jax.nn.softmax(s, axis=-1)
    o = jnp.einsum("bhqk,bhkd->bhqd", p, v)
    o = o.transpose(0, 2, 1, 3).reshape(B, Sq, D)
    return o @ params["out_proj_w"].T + params["out_proj_b"]


# ----------------------------------------- main -----------------------------------------

if __name__ == "__main__":
    B, Sq, Sk, D, H = 2, 8, 8, 32, 8   # dim=32, heads=8 -> head_dim=4

    key0 = jax.random.PRNGKey(0)
    ks = jax.random.split(key0, 8)

    query = jax.random.normal(ks[0], (B, Sq, D), jnp.float32)
    kv_key = jax.random.normal(ks[1], (B, Sk, D), jnp.float32)
    kv_val = jax.random.normal(ks[2], (B, Sk, D), jnp.float32)

    params = {
        # LayerNorms (PyTorch default init: gamma=1, beta=0)
        "ln_q_g": jnp.ones((D,), jnp.float32),
        "ln_q_b": jnp.zeros((D,), jnp.float32),
        "ln_kv_g": jnp.ones((D,), jnp.float32),
        "ln_kv_b": jnp.zeros((D,), jnp.float32),
        # nn.MultiheadAttention params (dropout=0.0; dim_head ctor arg unused by it)
        "in_proj_w": 0.05 * jax.random.normal(ks[3], (3 * D, D), jnp.float32),
        "in_proj_b": 0.05 * jax.random.normal(ks[4], (3 * D,), jnp.float32),
        "out_proj_w": 0.05 * jax.random.normal(ks[5], (D, D), jnp.float32),
        "out_proj_b": 0.05 * jax.random.normal(ks[6], (D,), jnp.float32),
    }

    out = cross_attention_layer(query, kv_key, kv_val, params, H)
    out = jax.block_until_ready(out)

    ref = reference(query, kv_key, kv_val, params, H)
    assert out.shape == (B, Sq, D)
    # Tolerance accounts for bf16 MXU operands (activations/weights/probabilities).
    assert jnp.allclose(out, ref, atol=1e-2, rtol=1e-2), "mismatch vs reference"

    print("KERNEL_OK")
</pallas_src>

<mosaic_0001>
module attributes {stable_mosaic.version = 11 : i64} {
  func.func @_ln_project_kernel(%arg0: i32, %arg1: i32, %arg2: memref<1x8x32xf32, #tpu.memory_space<vmem>>, %arg3: memref<32x32xbf16, #tpu.memory_space<vmem>>, %arg4: memref<1x32xf32, #tpu.memory_space<vmem>>, %arg5: memref<1x8x32xbf16, #tpu.memory_space<vmem>>) attributes {dimension_semantics = [#tpu.dimension_semantics<parallel>, #tpu.dimension_semantics<parallel>], iteration_bounds = array<i64: 2, 1>, scalar_prefetch = 0 : i64, scratch_operands = 0 : i64, tpu.core_type = #tpu.core_type<tc>, window_params = [{transform_indices = @transform_0, window_bounds = array<i64: 1, 8, 32>}, {pipeline_mode = #tpu.pipeline_mode<synchronous>, transform_indices = @transform_1, window_bounds = array<i64: 32, 32>}, {pipeline_mode = #tpu.pipeline_mode<synchronous>, transform_indices = @transform_2, window_bounds = array<i64: 1, 32>}, {transform_indices = @transform_3, window_bounds = array<i64: 1, 8, 32>}]} {
    %c0 = arith.constant 0 : index
    %c0_0 = arith.constant 0 : index
    %c0_1 = arith.constant 0 : index
    %0 = vector.load %arg2[%c0, %c0_0, %c0_1] : memref<1x8x32xf32, #tpu.memory_space<vmem>>, vector<1x8x32xf32>
    %1 = vector.shape_cast %0 : vector<1x8x32xf32> to vector<8x32xf32>
    %cst = arith.constant dense<0.000000e+00> : vector<8xf32>
    %2 = vector.multi_reduction <add>, %1, %cst [1] : vector<8x32xf32> to vector<8xf32>
    %3 = vector.shape_cast %2 : vector<8xf32> to vector<8x1xf32>
    %cst_2 = arith.constant 3.200000e+01 : f32
    %4 = vector.broadcast %cst_2 : f32 to vector<8x1xf32>
    %5 = arith.divf %3, %4 : vector<8x1xf32>
    %6 = vector.broadcast %5 : vector<8x1xf32> to vector<8x32xf32>
    %7 = arith.subf %1, %6 : vector<8x32xf32>
    %8 = arith.mulf %7, %7 : vector<8x32xf32>
    %cst_3 = arith.constant dense<0.000000e+00> : vector<8xf32>
    %9 = vector.multi_reduction <add>, %8, %cst_3 [1] : vector<8x32xf32> to vector<8xf32>
    %10 = vector.shape_cast %9 : vector<8xf32> to vector<8x1xf32>
    %cst_4 = arith.constant 3.200000e+01 : f32
    %11 = vector.broadcast %cst_4 : f32 to vector<8x1xf32>
    %12 = arith.divf %10, %11 : vector<8x1xf32>
    %13 = vector.broadcast %5 : vector<8x1xf32> to vector<8x32xf32>
    %14 = arith.subf %1, %13 : vector<8x32xf32>
    %cst_5 = arith.constant 9.99999974E-6 : f32
    %15 = vector.broadcast %cst_5 : f32 to vector<8x1xf32>
    %16 = arith.addf %12, %15 : vector<8x1xf32>
    %17 = math.rsqrt %16 : vector<8x1xf32>
    %18 = vector.broadcast %17 : vector<8x1xf32> to vector<8x32xf32>
    %19 = arith.mulf %14, %18 : vector<8x32xf32>
    %20 = arith.truncf %19 : vector<8x32xf32> to vector<8x32xbf16>
    %c0_6 = arith.constant 0 : index
    %c0_7 = arith.constant 0 : index
    %21 = vector.load %arg3[%c0_6, %c0_7] : memref<32x32xbf16, #tpu.memory_space<vmem>>, vector<32x32xbf16>
    %cst_8 = arith.constant dense<0.000000e+00> : vector<8x32xf32>
    %22 = tpu.matmul %20, %21, %cst_8 {dimension_numbers = #tpu.dot_dimension_numbers<[1], [0], [0], [1], [0, 0, 1, 1], [], []>} : vector<8x32xbf16>, vector<32x32xbf16>, vector<8x32xf32> -> vector<8x32xf32>
    %c0_9 = arith.constant 0 : index
    %c0_10 = arith.constant 0 : index
    %23 = vector.load %arg4[%c0_9, %c0_10] : memref<1x32xf32, #tpu.memory_space<vmem>>, vector<1x32xf32>
    %24 = vector.broadcast %23 : vector<1x32xf32> to vector<8x32xf32>
    %25 = arith.addf %22, %24 : vector<8x32xf32>
    %26 = arith.truncf %25 : vector<8x32xf32> to vector<8x32xbf16>
    %c0_11 = arith.constant 0 : index
    %c0_12 = arith.constant 0 : index
    %c0_13 = arith.constant 0 : index
    %27 = vector.load %arg5[%c0_11, %c0_12, %c0_13] : memref<1x8x32xbf16, #tpu.memory_space<vmem>>, vector<1x8x32xbf16>
    %28 = vector.shape_cast %27 : vector<1x8x32xbf16> to vector<8x32xbf16>
    %29 = vector.shape_cast %26 : vector<8x32xbf16> to vector<1x8x32xbf16>
    tpu.vector_store %arg5[%c0_11, %c0_12, %c0_13], %29 {strides = array<i32>} : memref<1x8x32xbf16, #tpu.memory_space<vmem>>, vector<1x8x32xbf16>,
    return
  }
  func.func @transform_0(%arg0: i32, %arg1: i32) -> (i32, i32, i32) {
    %c0_i32 = arith.constant 0 : i32
    %c0_i32_0 = arith.constant 0 : i32
    return %arg0, %arg1, %c0_i32 : i32, i32, i32
  }
  func.func @transform_1(%arg0: i32, %arg1: i32) -> (i32, i32) {
    %c0_i32 = arith.constant 0 : i32
    %c0_i32_0 = arith.constant 0 : i32
    %c0_i32_1 = arith.constant 0 : i32
    return %c0_i32, %c0_i32_0 : i32, i32
  }
  func.func @transform_2(%arg0: i32, %arg1: i32) -> (i32, i32) {
    %c0_i32 = arith.constant 0 : i32
    %c0_i32_0 = arith.constant 0 : i32
    %c0_i32_1 = arith.constant 0 : i32
    return %c0_i32, %c0_i32_0 : i32, i32
  }
  func.func @transform_3(%arg0: i32, %arg1: i32) -> (i32, i32, i32) {
    %c0_i32 = arith.constant 0 : i32
    %c0_i32_0 = arith.constant 0 : i32
    return %arg0, %arg1, %c0_i32 : i32, i32, i32
  }
}

</mosaic_0001>

<bundles_post_ra>
// kernel: tpu_custom_call.1
= control target key start
LH: loop header
LB: loop body
LE: loop exit
PB: predicated region body
PF: predicated region fallthrough
CT: control target
= control target key end

     0   :  { %8 = vsyncpa [#allocation3], 0  ;;  %s1011_s0 = inlined_call_operand.hbm [shape: f32[2,8,32], index: 0, kind: input, shape index: {}]   ;;  %s1012_s1 = inlined_call_operand.hbm [shape: bf16[32,32], index: 1, kind: input, shape index: {}]   ;;  %s1013_s2 = inlined_call_operand.hbm [shape: f32[1,32], index: 2, kind: input, shape index: {}]   ;;  %s1014_s3 = inlined_call_operand.hbm [shape: bf16[2,8,32], index: 3, kind: output, shape index: {}]  }
   0x1   :  { %10 = vsyncpa [#allocation3 + $0x1], 0 }
   0x2   :  { %11 = vsyncpa [#allocation6], 0 }
   0x3   :  { %12 = vsyncpa [#allocation4], 0 }
   0x4   :  { %14 = vsyncpa [#allocation4 + $0x1], 0  ;;  %s756_s12 = smov 0   ;;  %s758_s13 = smov 0  }
   0x5   :  { %s760_s14 = smov 0   ;;  %s762_s15 = smov 0  }
   0x6   :  { %s764_s16 = smov 0   ;;  %s766_s17 = smov 0  }
   0x7 LB: > { %s431_s18 = sadd.s32 4294967295, %s726_s17   ;;  %s432_s19 = sadd.s32 4294967294, %s726_s17   ;;  %s726_s17 = sphi %s766_s17, %s20_s17   ;;  %s722_s16 = sphi %s764_s16, %s1036_s16   ;;  %s718_s15 = sphi %s762_s15, %s1035_s15   ;;  %s714_s14 = sphi %s760_s14, %s1034_s14   ;;  %s710_s13 = sphi %s758_s13, %s1033_s13   ;;  %s706_s12 = sphi %s756_s12, %s1032_s12  }
   0x8   : > { %p54_p0 = scmp.ne.s32.totalorder %s710_s13, %s706_s12  ;;  %p790_p1 = scmp.eq.s32.totalorder %s431_s18, 0 }
   0x9   : > { %p794_p2 = scmp.eq.s32.totalorder %s431_s18, 1  ;;  %p128_p3 = scmp.eq.s32.totalorder %s432_s19, 1 }
   0xa   : > { %s1019_s20 = scalar_select %p790_p1, 1, 0 }
   0xb   : > { %p800_p4 = por %p790_p1, %p54_p0  ;;  %p433_p5 = scmp.ge.s32.totalorder %s726_s17, 1 }
   0xc   : > { %p805_p6 = por %p128_p3, %p54_p0  ;;  %p135_p7 = scmp.lt.s32.totalorder %s726_s17, 3 }
   0xd   : > { %s1021_s22 = scalar_select %p800_p4, 1, 0 }
   0xe   : > { %s1022_s23 = scalar_select %p805_p6, 1, 0 }
   0xf   : > { %p810_p8 = pnand %p433_p5, %p135_p7  ;;  %s728_s25 = smov [#allocation5]  }
  0x10   : > { %s147_s26 = sshll.u32 %s728_s25, 4  ;;  %s729_s28 = smov [#allocation7]   ;;  %s814_s26 = int_to_ptr.vmem [resolvable:$true] %s147_s26 }
  0x11   : > { %p475_p9 = pneg %p810_p8  ;;  %s161_s29 = sshll.u32 %s729_s28, 4  ;;  %s825_s29 = int_to_ptr.vmem [resolvable:$true] %s161_s29 }
  0x12   : > { %s554_s5 = scalar_lea.hbm %s1012_s1, 256 }
  0x13   : > { %p821_p11 = pnand %p475_p9, %p790_p1  ;;  %p555_p12 = scmp.ne.s32.totalorder %s1012_s1, %s554_s5 }
  0x14   : > { %p561_p5 = scmp.lt.u32.totalorder %s554_s5, %s1012_s1 }
  0x15   : > { %p556_p13 = pneg %p821_p11 }
  0x17   : > { %p557_p0 = pnand %p556_p13, %p555_p12 }
  0x19   : > { %p558_p3 = pneg %p557_p0 }
  0x1b   : > { %p563_p7 = pnand %p561_p5, %p558_p3 }
  0x1d   : > { %566 = shalt.err (!%p563_p7)
}
  0x1e   : > { %s567_s10 = scalar_lea.vmem %s814_s26, 256  ;;  %p575_p1 = scmp.lt.s32.totalorder %s814_s26, %s814_s26 }
  0x1f   : > { %p568_p9 = scmp.ne.s32.totalorder %s814_s26, %s567_s10  ;;  %p576_p12 = scmp.lt.s32.totalorder %s567_s10, %s567_s10 }
  0x21   : > { %p570_p10 = pnand %p568_p9, %p556_p13  ;;  %p577_p0 = por %p576_p12, %p575_p1 }
  0x23   : > { %p571_p6 = pneg %p570_p10 }
  0x25   : > { %p578_p4 = pnand %p577_p0, %p571_p6 }
  0x27   : > { %581 = shalt.err (!%p578_p4)
}
  0x28   : > { %s730_s11 = smov 64   ;;  %s731_s18 = smov 4  }
  0x29   : > { %478 = dma.hbm_to_vmem [thread:$0]  (!%p821_p11), %s1012_s1, 256, %s814_s26, [#allocation6], %s730_s11, %s730_s11, %s731_s18  }
  0x2a   : > { %s582_s4 = scalar_lea.hbm %s1013_s2, 16 }
  0x2b   : > { %p583_p1 = scmp.ne.s32.totalorder %s1013_s2, %s582_s4  ;;  %p589_p10 = scmp.lt.u32.totalorder %s582_s4, %s1013_s2 }
  0x2d   : > { %p585_p4 = pnand %p583_p1, %p556_p13 }
  0x2f   : > { %p586_p6 = pneg %p585_p4 }
  0x31   : > { %p591_p3 = pnand %p589_p10, %p586_p6 }
  0x33   : > { %594 = shalt.err (!%p591_p3)
}
  0x34   : > { %s595_s26 = scalar_lea.vmem %s825_s29, 16  ;;  %s602_s9 = scalar_lea.vmem %s825_s29, 32 }
  0x35   : > { %p596_p5 = scmp.ne.s32.totalorder %s825_s29, %s595_s26  ;;  %p603_p12 = scmp.lt.s32.totalorder %s825_s29, %s825_s29 }
  0x36   : > { %p604_p0 = scmp.lt.s32.totalorder %s602_s9, %s595_s26 }
  0x37   : > { %p598_p7 = pnand %p596_p5, %p556_p13 }
  0x38   : > { %p605_p1 = por %p604_p0, %p603_p12 }
  0x39   : > { %p599_p9 = pneg %p598_p7 }
  0x3b   : > { %p606_p4 = pnand %p605_p1, %p599_p9 }
  0x3d   : > { %609 = shalt.err (!%p606_p4)
}
  0x3e   : > { %481 = dma.hbm_to_vmem [thread:$0]  (!%p821_p11), %s1013_s2, 16, %s825_s29, [#allocation6]  }
  0x3f   : > { %s32_s18 = sadd.s32 1, %s722_s16  ;;  %s41_s19 = sadd.s32 1, %s714_s14 }
  0x40   : > { %p34_p13 = scmp.ge.s32.totalorder %s32_s18, 2  ;;  %p48_p6 = scmp.ne.s32.totalorder %s714_s14, %s710_s13 }
  0x41   : > { %p49_p10 = scmp.eq.s32.totalorder %s726_s17, 0  ;;  %p492_p3 = scmp.lt.s32.totalorder %s726_s17, 2 }
  0x42   : > { %s1038_s18 = smov (%p34_p13, %s32_s18), 0  ;;  %p890_p7 = por %p794_p2, %p48_p6 }
  0x43   : > { %p50_p5 = por %p49_p10, %p48_p6  ;;  %s36_s25 = ssub.s32 %s722_s16, %s1038_s18 }
  0x44   : > { %s1025_s27 = scalar_select %p890_p7, 1, 0 }
  0x45   : > { %s172_s28 = sand.u32 1, %s714_s14   ;;  %p39_p9 = scmp.eq.s32.totalorder %s36_s25, 0 }
  0x46   : > { %s437_s29 = sshll.u32 %s172_s28, 3  ;;  %s438_s30 = sshll.u32 %s722_s16, 7 }
  0x47   : > { %s899_s4 = scalar_select %p39_p9, %s714_s14, %s41_s19  }
  0x48   : > { %s904_s7 = scalar_lea.hbm %s1011_s0, %s438_s30  ;;  %s176_s21 = scalar_lea.vmem [#allocation2], %s437_s29 }
  0x49   : > { %s184_s8 = sshll.u32 %s176_s21, 4  ;;  %p908_p2 = pnand %p492_p3, %p50_p5  ;;  %s912_s8 = int_to_ptr.vmem [resolvable:$true] %s184_s8 }
  0x4a   : > { %s173_s9 = scalar_lea.sflag [#allocation3], %s172_s28  ;;  %s610_s10 = scalar_lea.hbm %s904_s7, 128 }
  0x4b   : > { %p611_p11 = scmp.ne.s32.totalorder %s904_s7, %s610_s10  ;;  %p612_p12 = pneg %p908_p2 }
  0x4c   : > { %s615_s25 = scalar_lea.hbm %s1011_s0, 256  ;;  %p616_p4 = scmp.lt.u32.totalorder %s904_s7, %s1011_s0 }
  0x4d   : > { %p613_p0 = pnand %p612_p12, %p611_p11  ;;  %p617_p13 = scmp.lt.u32.totalorder %s615_s25, %s610_s10 }
  0x4e   : > { %p619_p10 = scmp.lt.u32.totalorder %s610_s10, %s904_s7 }
  0x4f   : > { %p614_p1 = pneg %p613_p0  ;;  %p618_p6 = por %p617_p13, %p616_p4 }
  0x51   : > { %p620_p3 = por %p619_p10, %p618_p6 }
  0x53   : > { %p621_p5 = pnand %p620_p3, %p614_p1 }
  0x55   : > { %624 = shalt.err (!%p621_p5)
}
  0x56   : > { %s625_s28 = scalar_lea.vmem %s912_s8, 128  ;;  %s732_s5 = smov [#allocation2]  }
  0x57   : > { %p626_p9 = scmp.ne.s32.totalorder %s912_s8, %s625_s28  ;;  %s630_s6 = sshll.u32 %s732_s5, 4  ;;  %s631_s6 = int_to_ptr.vmem [resolvable:$false] %s630_s6 }
  0x58   : > { %s632_s21 = scalar_lea.vmem %s631_s6, 256  ;;  %p633_p7 = scmp.lt.s32.totalorder %s912_s8, %s631_s6 }
  0x59   : > { %p628_p11 = pnand %p626_p9, %p612_p12  ;;  %p634_p4 = scmp.lt.s32.totalorder %s632_s21, %s625_s28 }
  0x5b   : > { %p629_p0 = pneg %p628_p11  ;;  %p635_p13 = por %p634_p4, %p633_p7 }
  0x5d   : > { %p636_p6 = pnand %p635_p13, %p629_p0 }
  0x5f   : > { %639 = shalt.err (!%p636_p6)
}
  0x60   : > { %485 = dma.hbm_to_vmem [thread:$0]  (!%p908_p2), %s904_s7, 128, %s912_s8, %s173_s9  }
  0x61   : > { %193 = sbr.rel (%p810_p8) target bundleno = 650 (0x28a), region = 32  ;;  %s942_s10 = sand.u32 (!%p810_p8), 1, %s710_s13  }
  0x62   : > { %s440_s11 = sshll.u32 (!%p810_p8), %s942_s10, 3  ;;  %s196_s19 = scalar_lea.sflag (!%p810_p8), [#allocation3], %s942_s10 }
  0x63   : > { %s199_s25 = scalar_lea.vmem (!%p810_p8), [#allocation2], %s440_s11  ;;  %p1027_p7 = scmp.ne.s32.totalorder (!%p810_p8), %s1021_s22, 0 }
  0x68   : > { %693 = dma.done.wait (%p1027_p7), %s196_s19, 128  }
  0x69   : > { %695 = vsyncadd (%p1027_p7), %s196_s19, 4294967168  ;;  %p1028_p12 = scmp.ne.s32.totalorder %s1019_s20, 0 }
  0x6b   : > { %697 = dma.done.wait (%p1028_p12), [#allocation6], 272  }
  0x6c   : > { %699 = vsyncadd (%p1028_p12), [#allocation6], 4294967024  ;;  %vm232_vm0 = vcmask 261120   ;;  %v231_v0 = vld [vmem:[%s199_s25] sm:$0xff]  ;;  %v550_v7 = vld [vmem:[#allocation5] sm:$0xff]   ;;  %v733_v8 = vmov 0.0  }
  0x6d   : > { %v233_v1 = vsel %vm232_vm0, %v231_v0, 0.0  ;;  %455 = vmatprep.subr.bf16.mxu0 %v733_v8  ;;  %vm734_vm1 = vmmov 0   ;;  %v551_v9 = vld [vmem:[#allocation5 + $0x8] sm:$0xff]   ;;  %s443_s20 = sshll.u32 %s942_s10, 2  ;;  %v444_v16 = vld [vmem:[#allocation7] ss:$0 sm:$0xff] }
  0x6e   : > { %234 = vadd.xlane.f32.xlu0 %v233_v1  ;;  %459 = vmatprep.mubr.msk.bf16.mxu0 %vm734_vm1, %v733_v8  ;;  %s449_s22 = sshll.u32 %s718_s15, 6  ;;  %s229_s24 = scalar_lea.vmem [#allocation8], %s443_s20  ;;  %vm315_vm2 = vcmask 257024  }
  0x6f   : > { %456 = vmatpush3.bf16.msra.mxu0 %v550_v7  ;;  %s332_s7 = sshll.u32 %s229_s24, 4  ;;  %s962_s9 = scalar_lea.hbm %s1014_s3, %s449_s22  ;;  %s964_s7 = int_to_ptr.vmem [resolvable:$true] %s332_s7 }
  0x70   : > { %457 = vmatprep.subr.bf16.mxu0 %v733_v8  ;;  %s318_s15 = scalar_lea.sflag [#allocation4], %s942_s10  ;;  %s640_s29 = scalar_lea.vmem %s964_s7, 64 }
  0x71   : > { %p641_p8 = scmp.ne.s32.totalorder %s964_s7, %s640_s29  ;;  %p1029_p2 = scmp.ne.s32.totalorder %s1025_s27, 0 }
  0x72   : > { %s735_s30 = smov [#allocation8]  }
  0x73   : > { %458 = vmatpush3.bf16.msra.mxu0 %v551_v9  ;;  %p642_p1 = pnand %p641_p8, %p1029_p2  ;;  %s644_s28 = sshll.u32 %s735_s30, 4  ;;  %s645_s28 = int_to_ptr.vmem [resolvable:$false] %s644_s28 }
  0x74   : > { %s646_s5 = scalar_lea.vmem %s645_s28, 128  ;;  %p647_p3 = scmp.lt.s32.totalorder %s964_s7, %s645_s28 }
  0x75   : > { %p643_p10 = pneg %p642_p1  ;;  %p648_p5 = scmp.lt.s32.totalorder %s646_s5, %s640_s29 }
  0x77   : > { %p649_p9 = por %p648_p5, %p647_p3 }
  0x79   : > { %p650_p11 = pnand %p649_p9, %p643_p10 }
  0xfb   : > { %v235_v2 = vpop.xlane.xlu0 %234 }
  0xfc   : > { %v237_v3 = vmul.f32 0.03125, %v235_v2 }
  0xfe   : > { %v238_v4 = vsub.f32 %v231_v0, %v237_v3 }
 0x100   : > { %v239_v5 = vmul.f32 %v238_v4, %v238_v4 }
 0x102   : > { %v240_v6 = vsel %vm232_vm0, %v239_v5, 0.0 }
 0x103   : > { %241 = vadd.xlane.f32.xlu0 %v240_v6 }
 0x190   : > { %v242_v10 = vpop.xlane.xlu0 %241 }
 0x191   : > { %v243_v11 = vmul.f32 0.03125, %v242_v10 }
 0x193   : > { %v244_v12 = vadd.f32 1e-05, %v243_v11 }
 0x195   : > { %552 = vrsqrt.f32 %v244_v12 }
 0x19f   : > { %v553_v13 = vpop.eup %552 }
 0x1a0   : > { %v246_v14 = vmul.f32 %v553_v13, %v238_v4 }
 0x1a2   : > { %v247_v15 = vpack.c.bf16 %v246_v14, %v246_v14 }
 0x1a4   : > { %460 = vmatmul.mubr.msk.bf16.vlgmr.msra.gmra.mrb[0].mxu0 %vm232_vm0, %v247_v15 }
 0x277   : > { %v308_v17 = vpop.f32.mrb[0].mxu0 }
 0x278   : > { %v309_v18 = vadd.f32 %v444_v16, %v308_v17  ;;  %v461_v19 = vpop.f32.mrb[1].mxu0 }
 0x279   : > { %v311_v20 = vpop.f32.mrb[2].mxu0 }
 0x27a   : > { %v314_v21 = vpack.c.bf16 %v309_v18, %v309_v18  ;;  %v462_v22 = vpop.f32.mrb[3].mxu0 }
 0x27c   : > { %316 = vst.msk [vmem:[%s229_s24] sm:$0xf] %vm315_vm2, %v314_v21 }
 0x27d   : > { %653 = shalt.err (!%p650_p11)
}
 0x27e   : > { %s654_s6 = scalar_lea.hbm %s962_s9, 64  ;;  %s658_s11 = scalar_lea.hbm %s1014_s3, 128 }
 0x27f   : > { %p655_p0 = scmp.ne.s32.totalorder %s962_s9, %s654_s6  ;;  %p659_p6 = scmp.lt.u32.totalorder %s962_s9, %s1014_s3 }
 0x280   : > { %p660_p7 = scmp.lt.u32.totalorder %s658_s11, %s654_s6  ;;  %p662_p8 = scmp.lt.u32.totalorder %s654_s6, %s962_s9 }
 0x281   : > { %p656_p4 = pnand %p655_p0, %p1029_p2 }
 0x282   : > { %p661_p12 = por %p660_p7, %p659_p6 }
 0x283   : > { %p657_p13 = pneg %p656_p4 }
 0x284   : > { %p663_p1 = por %p662_p8, %p661_p12 }
 0x286   : > { %p664_p10 = pnand %p663_p1, %p657_p13 }
 0x288   : > { %667 = shalt.err (!%p664_p10)
}
 0x289   : > { %473 = dma.vmem_to_hbm [thread:$0]  (%p1029_p2), %s964_s7, 64, %s962_s9, %s318_s15  }
 0x28a PF: > { %s344_s20 = sand.u32 1, %s706_s12   ;;  %p1030_p3 = scmp.ne.s32.totalorder %s1022_s23, 0 }
 0x28b   : > { %p1031_p5 = scmp.ge.s32.totalorder %s726_s17, 2  ;;  %s345_s22 = scalar_lea.sflag [#allocation4], %s344_s20 }
 0x28d   : > { %p487_p9 = pnand %p1031_p5, %p1030_p3 }
 0x28f   : > { %701 = dma.done.wait (!%p487_p9), %s345_s22, 64  }
 0x290   : > { %703 = vsyncadd (!%p487_p9), %s345_s22, 4294967232  ;;  %s20_s17 = sadd.s32 1, %s726_s17   ;;  %s1032_s12 = smov %s710_s13 }
 0x291   : > { %p17_p11 = scmp.ge.s32.totalorder %s20_s17, 4   ;;  %s1033_s13 = smov %s714_s14 }
 0x292   : > { %s1034_s14 = smov %s899_s4  ;;  %s1035_s15 = smov %s722_s16 }
 0x293   : > { %s1036_s16 = smov %s1038_s18  ;;  %19 = sbr.rel (!%p17_p11) target bundleno = 7 (0x7), region = 85 }
 0x29a   :  { %350 = vsyncpa [#allocation3], 1 }
 0x29b   :  { %352 = vsyncpa [#allocation3 + $0x1], 1 }
 0x29c   :  { %353 = vsyncpa [#allocation6], 1 }
 0x29d   :  { %354 = vsyncpa [#allocation4], 1 }
 0x29e   :  { %356 = vsyncpa [#allocation4 + $0x1], 1 }

</bundles_post_ra>
